<compile_context>
chip_gen: v6e
topology: v6e:2x2x1
jax: 0.10.0
libtpu: 0.0.40
codegen_flags: <defaults>
</compile_context>

<pallas_src>
import functools
import math

import jax
import jax.numpy as jnp
import numpy as np
from jax.experimental import pallas as pl
from jax.experimental.pallas import tpu as pltpu

NEG_INF = float(np.finfo(np.float32).min)   # torch.finfo(torch.float32).min
LN_EPS = 1e-5


def _ln(v, g, b):
    mu = jnp.mean(v, axis=-1, keepdims=True)
    var = jnp.mean(jnp.square(v - mu), axis=-1, keepdims=True)
    return (v - mu) * jax.lax.rsqrt(var + LN_EPS) * g + b


# ----------------------------------------------------------------------------
# Kernel 1: fused embeddings + embed_ln + wpe (interleave-ready layout)
# ----------------------------------------------------------------------------
def _embed_kernel(st_ref, ac_ref, rt_ref, te_ref,
                  ws_ref, bs_ref, wa_ref, ba_ref, wr_ref, br_ref,
                  g_ref, b_ref, wpe_ref, o_ref):
    te = te_ref[0]                                           # (S, H)
    se = jnp.dot(st_ref[0], ws_ref[...],
                 preferred_element_type=jnp.float32) + bs_ref[...] + te
    ae = jnp.dot(ac_ref[0], wa_ref[...],
                 preferred_element_type=jnp.float32) + ba_ref[...] + te
    # return embedding has input dim 1 -> broadcast multiply instead of a K=1 matmul
    re = rt_ref[0] * wr_ref[...] + br_ref[...] + te

    def ln(v):
        return _ln(v, g_ref[...], b_ref[...])

    # (R_t, s_t, a_t) interleave: row k of the size-3 axis is token 3t+k; the
    # wrapper's contiguous reshape turns (B, S, 3, H) into the (B, 3S, H) stream.
    o_ref[0, :, 0, :] = ln(re) + wpe_ref[0]
    o_ref[0, :, 1, :] = ln(se) + wpe_ref[1]
    o_ref[0, :, 2, :] = ln(ae) + wpe_ref[2]


# ----------------------------------------------------------------------------
# Kernel 2: batch-blocked GPT-2 stack + fused ln_f / prediction heads
#   grid = (num_batch_blocks, num_layers);  layer axis innermost, "arbitrary".
# ----------------------------------------------------------------------------
def _stack_kernel(x_ref, kmask_ref,
                  ln1g_ref, ln1b_ref, wqkv_ref, bqkv_ref, wproj_ref, bproj_ref,
                  ln2g_ref, ln2b_ref, wfc_ref, bfc_ref, wfc2_ref, bfc2_ref,
                  lnfg_ref, lnfb_ref, whs_ref, bhs_ref, wha_ref, bha_ref,
                  out_ref,
                  res_ref, ctx_ref, valid_ref,
                  *, n_head, head_dim, batch_block, seq_len):
    H = n_head * head_dim
    T = 3 * seq_len
    layer = pl.program_id(1)

    # --- once per batch block: load residual stream + build causal/pad mask ---
    @pl.when(layer == 0)
    def _init():
        for b in range(batch_block):
            res_ref[pl.ds(b * T, T), :] = x_ref[b]
        row = jax.lax.broadcasted_iota(jnp.int32, (T, T), 0)
        col = jax.lax.broadcasted_iota(jnp.int32, (T, T), 1)
        causal = row >= col
        key_ok = kmask_ref[:, 0, :] > 0.5                    # (Bb, T)
        valid_ref[...] = (causal[None, :, :] & key_ok[:, None, :]).astype(jnp.float32)

    x = res_ref[...]                                         # (Bb*T, H) f32

    # --- attention: one fused QKV matmul over the whole batch block -----------
    h1 = _ln(x, ln1g_ref[0], ln1b_ref[0]).astype(jnp.bfloat16)
    qkv = jnp.dot(h1, wqkv_ref[0], preferred_element_type=jnp.float32) + bqkv_ref[0]
    inv_scale = 1.0 / math.sqrt(head_dim)
    for b in range(batch_block):
        rows = qkv[b * T:(b + 1) * T, :]                     # (T, 3H) static slice
        valid_b = valid_ref[b] > 0.5                         # (T, T)
        head_ctx = []
        for hh in range(n_head):
            lo = hh * head_dim
            q = rows[:, lo:lo + head_dim]
            k = rows[:, H + lo:H + lo + head_dim]
            v = rows[:, 2 * H + lo:2 * H + lo + head_dim]
            s = jax.lax.dot_general(q, k, (((1,), (1,)), ((), ())),
                                    preferred_element_type=jnp.float32) * inv_scale
            s = jnp.where(valid_b, s, NEG_INF)
            s = s - jnp.max(s, axis=-1, keepdims=True)
            e = jnp.exp(s)
            p = e * pl.reciprocal(jnp.sum(e, axis=-1, keepdims=True), approx=True)
            head_ctx.append(jnp.dot(p, v, preferred_element_type=jnp.float32))
        ctx_ref[pl.ds(b * T, T), :] = jnp.concatenate(head_ctx, axis=-1)
    # single head-dense output projection over the whole batch block
    attn = jnp.dot(ctx_ref[...].astype(jnp.bfloat16), wproj_ref[0],
                   preferred_element_type=jnp.float32) + bproj_ref[0]
    x = x + attn

    # --- MLP with gelu_new -----------------------------------------------------
    h2 = _ln(x, ln2g_ref[0], ln2b_ref[0]).astype(jnp.bfloat16)
    f = jnp.dot(h2, wfc_ref[0], preferred_element_type=jnp.float32) + bfc_ref[0]
    f = 0.5 * f * (1.0 + jnp.tanh(math.sqrt(2.0 / math.pi) * (f + 0.044715 * f * f * f)))
    f = jnp.dot(f.astype(jnp.bfloat16), wfc2_ref[0],
                preferred_element_type=jnp.float32) + bfc2_ref[0]
    res_ref[...] = x + f

    # --- fused epilogue on the last layer: ln_f + both heads, lane-dense store --
    @pl.when(layer == pl.num_programs(1) - 1)
    def _epilogue():
        n_tok = batch_block * seq_len
        # token 3t+1 = state token -> action head ; token 3t+2 = action token -> state head
        xa = res_ref[pl.ds(1, n_tok, stride=3), :]
        xs = res_ref[pl.ds(2, n_tok, stride=3), :]
        xa = _ln(xa, lnfg_ref[...], lnfb_ref[...])
        xs = _ln(xs, lnfg_ref[...], lnfb_ref[...])
        # head weights are zero-padded into disjoint lane ranges of a 128-wide slab,
        # so the sum below is a dense (lane-full) store: state in [0,sd), action in [sd,sd+ad).
        st = jnp.dot(xs, whs_ref[...], preferred_element_type=jnp.float32) + bhs_ref[...]
        ac = jnp.tanh(jnp.dot(xa, wha_ref[...], preferred_element_type=jnp.float32)
                      + bha_ref[...])
        combined = st + ac
        for b in range(batch_block):
            out_ref[b] = combined[b * seq_len:(b + 1) * seq_len, :]


# ----------------------------------------------------------------------------
# Parameter packing (once, outside the forward)
# ----------------------------------------------------------------------------
def pack_params(p):
    H = p["embed_state"]["w"].shape[1]
    sd = p["predict_state"]["w"].shape[1]
    ad = p["predict_action"]["w"].shape[1]
    P = ((sd + ad + 127) // 128) * 128          # lane-dense padded head width
    bf = jnp.bfloat16

    def stack(fn):
        return jnp.stack([fn(blk) for blk in p["blocks"]], axis=0)

    whs = jnp.zeros((H, P), jnp.float32).at[:, :sd].set(p["predict_state"]["w"])
    bhs = jnp.zeros((1, P), jnp.float32).at[0, :sd].set(p["predict_state"]["b"])
    wha = jnp.zeros((H, P), jnp.float32).at[:, sd:sd + ad].set(p["predict_action"]["w"])
    bha = jnp.zeros((1, P), jnp.float32).at[0, sd:sd + ad].set(p["predict_action"]["b"])

    return {
        "embed_state_w": p["embed_state"]["w"],
        "embed_state_b": p["embed_state"]["b"].reshape(1, -1),
        "embed_action_w": p["embed_action"]["w"],
        "embed_action_b": p["embed_action"]["b"].reshape(1, -1),
        "embed_return_w": p["embed_return"]["w"].reshape(1, -1),
        "embed_return_b": p["embed_return"]["b"].reshape(1, -1),
        "embed_timestep": p["embed_timestep"],
        "wpe": p["wpe"],
        "embed_ln_g": p["embed_ln"]["g"].reshape(1, -1),
        "embed_ln_b": p["embed_ln"]["b"].reshape(1, -1),
        # stacked per-layer transformer weights (bf16 matmul operands)
        "ln1_g": stack(lambda b: b["ln1_g"].reshape(1, H)),
        "ln1_b": stack(lambda b: b["ln1_b"].reshape(1, H)),
        "wqkv": stack(lambda b: b["wqkv"]).astype(bf),
        "bqkv": stack(lambda b: b["bqkv"].reshape(1, -1)),
        "wproj": stack(lambda b: b["wproj"]).astype(bf),
        "bproj": stack(lambda b: b["bproj"].reshape(1, -1)),
        "ln2_g": stack(lambda b: b["ln2_g"].reshape(1, H)),
        "ln2_b": stack(lambda b: b["ln2_b"].reshape(1, H)),
        "wfc": stack(lambda b: b["wfc"]).astype(bf),
        "bfc": stack(lambda b: b["bfc"].reshape(1, -1)),
        "wfc2": stack(lambda b: b["wfc2"]).astype(bf),
        "bfc2": stack(lambda b: b["bfc2"].reshape(1, -1)),
        # epilogue (kept f32; lane-padded into disjoint ranges of one 128-wide slab)
        "ln_f_g": p["ln_f_g"].reshape(1, -1),
        "ln_f_b": p["ln_f_b"].reshape(1, -1),
        "w_head_state": whs,
        "b_head_state": bhs,
        "w_head_action": wha,
        "b_head_action": bha,
    }


# ----------------------------------------------------------------------------
# VMEM sizing / batch-block choice
# ----------------------------------------------------------------------------
def _kernel2_vmem_bytes(bb, seq, H, inner, P):
    T = 3 * seq
    M = bb * T
    scratch = 2 * M * H * 4 + bb * T * T * 4                       # res + ctx + mask
    inputs = 2 * (bb * T * H * 4 + bb * T * 4)                     # x + key mask (dbl buf)
    w_layer = 2 * ((H * 3 * H + H * H + 2 * H * inner) * 2         # bf16 weights (dbl buf)
                   + (3 * H + 7 * H + inner) * 4)                  # biases / LN params
    heads = (2 * H * P + 2 * P + 4 * H) * 4
    out = 2 * bb * seq * P * 4
    act = 2 * M * max(3 * H, inner) * 4                            # live activation headroom
    return scratch + inputs + w_layer + heads + out + act


def _vmem_capacity_bytes():
    try:
        return int(pltpu.get_tpu_info().vmem_capacity_bytes)
    except Exception:
        return 64 * 1024 * 1024          # conservative (v7x per-core VMEM)


def _pick_batch_block(B, seq, H, inner, P):
    cap = _vmem_capacity_bytes()
    budget = int(0.7 * cap)
    bb = 1
    for cand in range(1, B + 1):
        if B % cand == 0 and _kernel2_vmem_bytes(cand, seq, H, inner, P) <= budget:
            bb = cand
    return bb, cap


# ----------------------------------------------------------------------------
# Forward pass (2 pallas_call launches)
# ----------------------------------------------------------------------------
def decision_transformer_forward(pp, states, actions, rewards, returns_to_go,
                                 timesteps, attention_mask=None, *, n_head, scale=1.0):
    # rewards / scale are unused with sar=False (reward embeddings never consumed).
    del rewards, scale

    B, S = states.shape[0], states.shape[1]
    sd, ad = states.shape[-1], actions.shape[-1]
    L, H = pp["wqkv"].shape[0], pp["wqkv"].shape[1]
    inner = pp["wfc"].shape[2]
    P = pp["w_head_state"].shape[1]
    hd = H // n_head
    T = 3 * S

    if attention_mask is None:
        attention_mask = jnp.ones((B, S), dtype=jnp.int32)

    # --- glue (pure metadata / tiny XLA ops) ---
    # TODO(synk): wpe stride-3 gather and key-mask repeat could be cached per (S,) config.
    time_emb = pp["embed_timestep"][timesteps]                        # embedding gather
    wpe_rsa = jnp.stack([pp["wpe"][k:T:3] for k in range(3)], axis=0)  # (3, S, H)
    key_mask = jnp.repeat(attention_mask.astype(jnp.float32), 3, axis=1).reshape(B, 1, T)
    # TODO(synk): GPT2 dropout layers omitted (identity at inference).

    # --- 1) fused embeddings + embed_ln + wpe ---
    emb = pl.pallas_call(
        _embed_kernel,
        out_shape=jax.ShapeDtypeStruct((B, S, 3, H), jnp.float32),
        grid=(B,),
        in_specs=[
            pl.BlockSpec((1, S, sd), lambda b: (b, 0, 0)),
            pl.BlockSpec((1, S, ad), lambda b: (b, 0, 0)),
            pl.BlockSpec((1, S, 1), lambda b: (b, 0, 0)),
            pl.BlockSpec((1, S, H), lambda b: (b, 0, 0)),
            pl.BlockSpec((sd, H), lambda b: (0, 0)),
            pl.BlockSpec((1, H), lambda b: (0, 0)),
            pl.BlockSpec((ad, H), lambda b: (0, 0)),
            pl.BlockSpec((1, H), lambda b: (0, 0)),
            pl.BlockSpec((1, H), lambda b: (0, 0)),
            pl.BlockSpec((1, H), lambda b: (0, 0)),
            pl.BlockSpec((1, H), lambda b: (0, 0)),
            pl.BlockSpec((1, H), lambda b: (0, 0)),
            pl.BlockSpec((3, S, H), lambda b: (0, 0, 0)),
        ],
        out_specs=pl.BlockSpec((1, S, 3, H), lambda b: (b, 0, 0, 0)),
        compiler_params=pltpu.CompilerParams(dimension_semantics=("parallel",)),
    )(states, actions, returns_to_go, time_emb,
      pp["embed_state_w"], pp["embed_state_b"],
      pp["embed_action_w"], pp["embed_action_b"],
      pp["embed_return_w"], pp["embed_return_b"],
      pp["embed_ln_g"], pp["embed_ln_b"], wpe_rsa)
    h = emb.reshape(B, T, H)                                  # free contiguous reshape

    # --- 2) batch-blocked transformer stack + fused epilogue ---
    Bb, cap = _pick_batch_block(B, S, H, inner, P)
    NB = B // Bb
    est = _kernel2_vmem_bytes(Bb, S, H, inner, P)
    vmem_limit = max(32 * 2 ** 20, 2 * est)
    vmem_limit = int(max(16 * 2 ** 20, min(vmem_limit, int(0.9 * cap))))

    preds = pl.pallas_call(
        functools.partial(_stack_kernel, n_head=n_head, head_dim=hd,
                          batch_block=Bb, seq_len=S),
        out_shape=jax.ShapeDtypeStruct((B, S, P), jnp.float32),
        grid=(NB, L),
        in_specs=[
            pl.BlockSpec((Bb, T, H), lambda b, l: (b, 0, 0)),            # residual in
            pl.BlockSpec((Bb, 1, T), lambda b, l: (b, 0, 0)),            # key padding mask
            pl.BlockSpec((1, 1, H), lambda b, l: (l, 0, 0)),             # ln1_g
            pl.BlockSpec((1, 1, H), lambda b, l: (l, 0, 0)),             # ln1_b
            pl.BlockSpec((1, H, 3 * H), lambda b, l: (l, 0, 0)),         # wqkv (fused)
            pl.BlockSpec((1, 1, 3 * H), lambda b, l: (l, 0, 0)),         # bqkv
            pl.BlockSpec((1, H, H), lambda b, l: (l, 0, 0)),             # wproj
            pl.BlockSpec((1, 1, H), lambda b, l: (l, 0, 0)),             # bproj
            pl.BlockSpec((1, 1, H), lambda b, l: (l, 0, 0)),             # ln2_g
            pl.BlockSpec((1, 1, H), lambda b, l: (l, 0, 0)),             # ln2_b
            pl.BlockSpec((1, H, inner), lambda b, l: (l, 0, 0)),         # wfc
            pl.BlockSpec((1, 1, inner), lambda b, l: (l, 0, 0)),         # bfc
            pl.BlockSpec((1, inner, H), lambda b, l: (l, 0, 0)),         # wfc2
            pl.BlockSpec((1, 1, H), lambda b, l: (l, 0, 0)),             # bfc2
            pl.BlockSpec((1, H), lambda b, l: (0, 0)),                   # ln_f g
            pl.BlockSpec((1, H), lambda b, l: (0, 0)),                   # ln_f b
            pl.BlockSpec((H, P), lambda b, l: (0, 0)),                   # state head w (padded)
            pl.BlockSpec((1, P), lambda b, l: (0, 0)),                   # state head b
            pl.BlockSpec((H, P), lambda b, l: (0, 0)),                   # action head w (padded)
            pl.BlockSpec((1, P), lambda b, l: (0, 0)),                   # action head b
        ],
        out_specs=pl.BlockSpec((Bb, S, P), lambda b, l: (b, 0, 0)),
        scratch_shapes=[pltpu.VMEM((Bb * T, H), jnp.float32),            # residual stream
                        pltpu.VMEM((Bb * T, H), jnp.float32),            # attention context
                        pltpu.VMEM((Bb, T, T), jnp.float32)],            # causal+pad mask
        compiler_params=pltpu.CompilerParams(
            dimension_semantics=("parallel", "arbitrary"),
            vmem_limit_bytes=vmem_limit),
    )(h, key_mask,
      pp["ln1_g"], pp["ln1_b"], pp["wqkv"], pp["bqkv"], pp["wproj"], pp["bproj"],
      pp["ln2_g"], pp["ln2_b"], pp["wfc"], pp["bfc"], pp["wfc2"], pp["bfc2"],
      pp["ln_f_g"], pp["ln_f_b"],
      pp["w_head_state"], pp["b_head_state"], pp["w_head_action"], pp["b_head_action"])

    state_preds = preds[..., :sd]
    action_preds = preds[..., sd:sd + ad]
    return state_preds, action_preds, None      # rewards_preds is None (sar=False)


# ----------------------------------------------------------------------------
# Deterministic parameter init + pure-JAX reference for validation
# ----------------------------------------------------------------------------
def init_params(key, state_dim, act_dim, hidden, n_layer, n_head, max_ep_len,
                n_positions, n_inner):
    keys = iter(jax.random.split(key, 128))

    def lin(din, dout):
        return {"w": 0.1 * jax.random.normal(next(keys), (din, dout), jnp.float32),
                "b": 0.02 * jax.random.normal(next(keys), (dout,), jnp.float32)}

    def ln_pair():
        return (1.0 + 0.1 * jax.random.normal(next(keys), (hidden,), jnp.float32),
                0.05 * jax.random.normal(next(keys), (hidden,), jnp.float32))

    p = {
        "embed_state": lin(state_dim, hidden),
        "embed_action": lin(act_dim, hidden),
        "embed_return": lin(1, hidden),
        "embed_rewards": lin(1, hidden),          # present in the module; unused (sar=False)
        "embed_timestep": 0.1 * jax.random.normal(next(keys), (max_ep_len, hidden), jnp.float32),
        "wpe": 0.02 * jax.random.normal(next(keys), (n_positions, hidden), jnp.float32),
    }
    g, b = ln_pair()
    p["embed_ln"] = {"g": g, "b": b}
    blocks = []
    for _ in range(n_layer):
        ln1g, ln1b = ln_pair()
        ln2g, ln2b = ln_pair()
        blocks.append({
            "ln1_g": ln1g, "ln1_b": ln1b,
            "wqkv": 0.1 * jax.random.normal(next(keys), (hidden, 3 * hidden), jnp.float32),
            "bqkv": 0.02 * jax.random.normal(next(keys), (3 * hidden,), jnp.float32),
            "wproj": 0.1 * jax.random.normal(next(keys), (hidden, hidden), jnp.float32),
            "bproj": 0.02 * jax.random.normal(next(keys), (hidden,), jnp.float32),
            "ln2_g": ln2g, "ln2_b": ln2b,
            "wfc": 0.1 * jax.random.normal(next(keys), (hidden, n_inner), jnp.float32),
            "bfc": 0.02 * jax.random.normal(next(keys), (n_inner,), jnp.float32),
            "wfc2": 0.1 * jax.random.normal(next(keys), (n_inner, hidden), jnp.float32),
            "bfc2": 0.02 * jax.random.normal(next(keys), (hidden,), jnp.float32),
        })
    p["blocks"] = blocks
    p["ln_f_g"], p["ln_f_b"] = ln_pair()
    p["predict_state"] = lin(hidden, state_dim)
    p["predict_action"] = lin(hidden, act_dim)
    return p


def reference_forward(p, states, actions, rewards, rtg, timesteps, attention_mask,
                      scale, n_head):
    B, S = states.shape[:2]
    H = p["embed_state"]["w"].shape[1]
    se = states @ p["embed_state"]["w"] + p["embed_state"]["b"]
    ae = actions @ p["embed_action"]["w"] + p["embed_action"]["b"]
    re = rtg @ p["embed_return"]["w"] + p["embed_return"]["b"]
    te = p["embed_timestep"][timesteps]
    se, ae, re = se + te, ae + te, re + te
    x = jnp.stack((re, se, ae), axis=1).transpose(0, 2, 1, 3).reshape(B, 3 * S, H)
    x = _ln(x, p["embed_ln"]["g"], p["embed_ln"]["b"])
    T = 3 * S
    x = x + p["wpe"][:T][None]
    mask3 = jnp.repeat(attention_mask, 3, axis=1).astype(jnp.float32)
    bias = (1.0 - mask3) * NEG_INF
    hd = H // n_head
    causal = jnp.tril(jnp.ones((T, T), bool))
    for blk in p["blocks"]:
        h = _ln(x, blk["ln1_g"], blk["ln1_b"])
        qkv = h @ blk["wqkv"] + blk["bqkv"]
        q, k, v = jnp.split(qkv, 3, axis=-1)
        q = q.reshape(B, T, n_head, hd).transpose(0, 2, 1, 3)
        k = k.reshape(B, T, n_head, hd).transpose(0, 2, 1, 3)
        v = v.reshape(B, T, n_head, hd).transpose(0, 2, 1, 3)
        s = jnp.einsum("bhqd,bhkd->bhqk", q, k) / math.sqrt(hd)
        s = jnp.where(causal[None, None], s, NEG_INF)
        s = s + bias[:, None, None, :]
        a = jnp.einsum("bhqk,bhkd->bhqd", jax.nn.softmax(s, axis=-1), v)
        a = a.transpose(0, 2, 1, 3).reshape(B, T, H) @ blk["wproj"] + blk["bproj"]
        x = x + a
        h = _ln(x, blk["ln2_g"], blk["ln2_b"])
        f = h @ blk["wfc"] + blk["bfc"]
        f = 0.5 * f * (1.0 + jnp.tanh(math.sqrt(2.0 / math.pi) * (f + 0.044715 * f ** 3)))
        f = f @ blk["wfc2"] + blk["bfc2"]
        x = x + f
    x = _ln(x, p["ln_f_g"], p["ln_f_b"])
    x = x.reshape(B, S, 3, H).transpose(0, 2, 1, 3)
    act = jnp.tanh(x[:, 1] @ p["predict_action"]["w"] + p["predict_action"]["b"])
    st = x[:, 2] @ p["predict_state"]["w"] + p["predict_state"]["b"]
    return st, act, None


# ----------------------------------------------------------------------------
if __name__ == "__main__":
    B, S = 2, 8
    state_dim, act_dim, H = 6, 3, 32
    n_layer, n_head, n_inner = 2, 2, 4 * H
    max_ep_len, n_positions = 64, 64

    key = jax.random.PRNGKey(0)
    kp, ks, ka, kr, kg = jax.random.split(key, 5)
    params = init_params(kp, state_dim, act_dim, H, n_layer, n_head,
                         max_ep_len, n_positions, n_inner)
    packed = pack_params(params)

    states = jax.random.normal(ks, (B, S, state_dim), jnp.float32)
    actions = jax.random.normal(ka, (B, S, act_dim), jnp.float32)
    rewards = jax.random.normal(kr, (B, S, 1), jnp.float32)
    returns_to_go = jax.random.normal(kg, (B, S, 1), jnp.float32)
    timesteps = jnp.tile(jnp.arange(S, dtype=jnp.int32)[None], (B, 1))

    state_preds, action_preds, rewards_preds = decision_transformer_forward(
        packed, states, actions, rewards, returns_to_go, timesteps,
        attention_mask=None, n_head=n_head, scale=1.0)
    jax.block_until_ready((state_preds, action_preds))

    st_ref, act_ref, _ = reference_forward(
        params, states, actions, rewards, returns_to_go, timesteps,
        jnp.ones((B, S), jnp.int32), 1.0, n_head)

    assert state_preds.shape == (B, S, state_dim)
    assert action_preds.shape == (B, S, act_dim)
    assert rewards_preds is None
    assert bool(jnp.all(jnp.isfinite(state_preds))) and bool(jnp.all(jnp.isfinite(action_preds)))
    # bf16 matmul operands (f32 accumulate) + approx-reciprocal softmax vs a pure-f32
    # reference -> slightly wider tolerance
    assert bool(jnp.allclose(state_preds, st_ref, atol=5e-2, rtol=5e-2))
    assert bool(jnp.allclose(action_preds, act_ref, atol=5e-2, rtol=5e-2))
    print("KERNEL_OK")
</pallas_src>

<mosaic_0001>
module attributes {stable_mosaic.version = 11 : i64} {
  func.func @_embed_kernel(%arg0: i32, %arg1: memref<1x8x6xf32, #tpu.memory_space<vmem>>, %arg2: memref<1x8x3xf32, #tpu.memory_space<vmem>>, %arg3: memref<1x8x1xf32, #tpu.memory_space<vmem>>, %arg4: memref<1x8x32xf32, #tpu.memory_space<vmem>>, %arg5: memref<6x32xf32, #tpu.memory_space<vmem>>, %arg6: memref<1x32xf32, #tpu.memory_space<vmem>>, %arg7: memref<3x32xf32, #tpu.memory_space<vmem>>, %arg8: memref<1x32xf32, #tpu.memory_space<vmem>>, %arg9: memref<1x32xf32, #tpu.memory_space<vmem>>, %arg10: memref<1x32xf32, #tpu.memory_space<vmem>>, %arg11: memref<1x32xf32, #tpu.memory_space<vmem>>, %arg12: memref<1x32xf32, #tpu.memory_space<vmem>>, %arg13: memref<3x8x32xf32, #tpu.memory_space<vmem>>, %arg14: memref<1x8x3x32xf32, #tpu.memory_space<vmem>>) attributes {dimension_semantics = [#tpu.dimension_semantics<parallel>], iteration_bounds = array<i64: 2>, scalar_prefetch = 0 : i64, scratch_operands = 0 : i64, tpu.core_type = #tpu.core_type<tc>, window_params = [{transform_indices = @transform_0, window_bounds = array<i64: 1, 8, 6>}, {transform_indices = @transform_1, window_bounds = array<i64: 1, 8, 3>}, {transform_indices = @transform_2, window_bounds = array<i64: 1, 8, 1>}, {transform_indices = @transform_3, window_bounds = array<i64: 1, 8, 32>}, {pipeline_mode = #tpu.pipeline_mode<synchronous>, transform_indices = @transform_4, window_bounds = array<i64: 6, 32>}, {pipeline_mode = #tpu.pipeline_mode<synchronous>, transform_indices = @transform_5, window_bounds = array<i64: 1, 32>}, {pipeline_mode = #tpu.pipeline_mode<synchronous>, transform_indices = @transform_6, window_bounds = array<i64: 3, 32>}, {pipeline_mode = #tpu.pipeline_mode<synchronous>, transform_indices = @transform_7, window_bounds = array<i64: 1, 32>}, {pipeline_mode = #tpu.pipeline_mode<synchronous>, transform_indices = @transform_8, window_bounds = array<i64: 1, 32>}, {pipeline_mode = #tpu.pipeline_mode<synchronous>, transform_indices = @transform_9, window_bounds = array<i64: 1, 32>}, {pipeline_mode = #tpu.pipeline_mode<synchronous>, transform_indices = @transform_10, window_bounds = array<i64: 1, 32>}, {pipeline_mode = #tpu.pipeline_mode<synchronous>, transform_indices = @transform_11, window_bounds = array<i64: 1, 32>}, {pipeline_mode = #tpu.pipeline_mode<synchronous>, transform_indices = @transform_12, window_bounds = array<i64: 3, 8, 32>}, {transform_indices = @transform_13, window_bounds = array<i64: 1, 8, 3, 32>}]} {
    %c0 = arith.constant 0 : index
    %c0_0 = arith.constant 0 : index
    %c0_1 = arith.constant 0 : index
    %0 = vector.load %arg4[%c0, %c0_0, %c0_1] : memref<1x8x32xf32, #tpu.memory_space<vmem>>, vector<1x8x32xf32>
    %1 = vector.shape_cast %0 : vector<1x8x32xf32> to vector<8x32xf32>
    %c0_2 = arith.constant 0 : index
    %c0_3 = arith.constant 0 : index
    %c0_4 = arith.constant 0 : index
    %2 = vector.load %arg1[%c0_2, %c0_3, %c0_4] : memref<1x8x6xf32, #tpu.memory_space<vmem>>, vector<1x8x6xf32>
    %3 = vector.shape_cast %2 : vector<1x8x6xf32> to vector<8x6xf32>
    %c0_5 = arith.constant 0 : index
    %c0_6 = arith.constant 0 : index
    %4 = vector.load %arg5[%c0_5, %c0_6] : memref<6x32xf32, #tpu.memory_space<vmem>>, vector<6x32xf32>
    %cst = arith.constant dense<0.000000e+00> : vector<8x32xf32>
    %5 = tpu.matmul %3, %4, %cst {dimension_numbers = #tpu.dot_dimension_numbers<[1], [0], [0], [1], [0, 0, 1, 1], [], []>} : vector<8x6xf32>, vector<6x32xf32>, vector<8x32xf32> -> vector<8x32xf32>
    %c0_7 = arith.constant 0 : index
    %c0_8 = arith.constant 0 : index
    %6 = vector.load %arg6[%c0_7, %c0_8] : memref<1x32xf32, #tpu.memory_space<vmem>>, vector<1x32xf32>
    %7 = vector.broadcast %6 : vector<1x32xf32> to vector<8x32xf32>
    %8 = arith.addf %5, %7 : vector<8x32xf32>
    %9 = arith.addf %8, %1 : vector<8x32xf32>
    %c0_9 = arith.constant 0 : index
    %c0_10 = arith.constant 0 : index
    %c0_11 = arith.constant 0 : index
    %10 = vector.load %arg2[%c0_9, %c0_10, %c0_11] : memref<1x8x3xf32, #tpu.memory_space<vmem>>, vector<1x8x3xf32>
    %11 = vector.shape_cast %10 : vector<1x8x3xf32> to vector<8x3xf32>
    %c0_12 = arith.constant 0 : index
    %c0_13 = arith.constant 0 : index
    %12 = vector.load %arg7[%c0_12, %c0_13] : memref<3x32xf32, #tpu.memory_space<vmem>>, vector<3x32xf32>
    %cst_14 = arith.constant dense<0.000000e+00> : vector<8x32xf32>
    %13 = tpu.matmul %11, %12, %cst_14 {dimension_numbers = #tpu.dot_dimension_numbers<[1], [0], [0], [1], [0, 0, 1, 1], [], []>} : vector<8x3xf32>, vector<3x32xf32>, vector<8x32xf32> -> vector<8x32xf32>
    %c0_15 = arith.constant 0 : index
    %c0_16 = arith.constant 0 : index
    %14 = vector.load %arg8[%c0_15, %c0_16] : memref<1x32xf32, #tpu.memory_space<vmem>>, vector<1x32xf32>
    %15 = vector.broadcast %14 : vector<1x32xf32> to vector<8x32xf32>
    %16 = arith.addf %13, %15 : vector<8x32xf32>
    %17 = arith.addf %16, %1 : vector<8x32xf32>
    %c0_17 = arith.constant 0 : index
    %c0_18 = arith.constant 0 : index
    %c0_19 = arith.constant 0 : index
    %18 = vector.load %arg3[%c0_17, %c0_18, %c0_19] : memref<1x8x1xf32, #tpu.memory_space<vmem>>, vector<1x8x1xf32>
    %19 = vector.shape_cast %18 : vector<1x8x1xf32> to vector<8x1xf32>
    %c0_20 = arith.constant 0 : index
    %c0_21 = arith.constant 0 : index
    %20 = vector.load %arg9[%c0_20, %c0_21] : memref<1x32xf32, #tpu.memory_space<vmem>>, vector<1x32xf32>
    %21 = vector.broadcast %19 : vector<8x1xf32> to vector<8x32xf32>
    %22 = vector.broadcast %20 : vector<1x32xf32> to vector<8x32xf32>
    %23 = arith.mulf %21, %22 : vector<8x32xf32>
    %c0_22 = arith.constant 0 : index
    %c0_23 = arith.constant 0 : index
    %24 = vector.load %arg10[%c0_22, %c0_23] : memref<1x32xf32, #tpu.memory_space<vmem>>, vector<1x32xf32>
    %25 = vector.broadcast %24 : vector<1x32xf32> to vector<8x32xf32>
    %26 = arith.addf %23, %25 : vector<8x32xf32>
    %27 = arith.addf %26, %1 : vector<8x32xf32>
    %c0_24 = arith.constant 0 : index
    %c0_25 = arith.constant 0 : index
    %28 = vector.load %arg11[%c0_24, %c0_25] : memref<1x32xf32, #tpu.memory_space<vmem>>, vector<1x32xf32>
    %c0_26 = arith.constant 0 : index
    %c0_27 = arith.constant 0 : index
    %29 = vector.load %arg12[%c0_26, %c0_27] : memref<1x32xf32, #tpu.memory_space<vmem>>, vector<1x32xf32>
    %cst_28 = arith.constant dense<0.000000e+00> : vector<8xf32>
    %30 = vector.multi_reduction <add>, %27, %cst_28 [1] : vector<8x32xf32> to vector<8xf32>
    %31 = vector.shape_cast %30 : vector<8xf32> to vector<8x1xf32>
    %cst_29 = arith.constant 3.200000e+01 : f32
    %32 = vector.broadcast %cst_29 : f32 to vector<8x1xf32>
    %33 = arith.divf %31, %32 : vector<8x1xf32>
    %34 = vector.broadcast %33 : vector<8x1xf32> to vector<8x32xf32>
    %35 = arith.subf %27, %34 : vector<8x32xf32>
    %36 = arith.mulf %35, %35 : vector<8x32xf32>
    %cst_30 = arith.constant dense<0.000000e+00> : vector<8xf32>
    %37 = vector.multi_reduction <add>, %36, %cst_30 [1] : vector<8x32xf32> to vector<8xf32>
    %38 = vector.shape_cast %37 : vector<8xf32> to vector<8x1xf32>
    %cst_31 = arith.constant 3.200000e+01 : f32
    %39 = vector.broadcast %cst_31 : f32 to vector<8x1xf32>
    %40 = arith.divf %38, %39 : vector<8x1xf32>
    %41 = vector.broadcast %33 : vector<8x1xf32> to vector<8x32xf32>
    %42 = arith.subf %27, %41 : vector<8x32xf32>
    %cst_32 = arith.constant 9.99999974E-6 : f32
    %43 = vector.broadcast %cst_32 : f32 to vector<8x1xf32>
    %44 = arith.addf %40, %43 : vector<8x1xf32>
    %45 = math.rsqrt %44 : vector<8x1xf32>
    %46 = vector.broadcast %45 : vector<8x1xf32> to vector<8x32xf32>
    %47 = arith.mulf %42, %46 : vector<8x32xf32>
    %48 = vector.broadcast %28 : vector<1x32xf32> to vector<8x32xf32>
    %49 = arith.mulf %47, %48 : vector<8x32xf32>
    %50 = vector.broadcast %29 : vector<1x32xf32> to vector<8x32xf32>
    %51 = arith.addf %49, %50 : vector<8x32xf32>
    %c0_33 = arith.constant 0 : index
    %c0_34 = arith.constant 0 : index
    %c0_35 = arith.constant 0 : index
    %52 = vector.load %arg13[%c0_33, %c0_34, %c0_35] : memref<3x8x32xf32, #tpu.memory_space<vmem>>, vector<1x8x32xf32>
    %53 = vector.shape_cast %52 : vector<1x8x32xf32> to vector<8x32xf32>
    %54 = arith.addf %51, %53 : vector<8x32xf32>
    %c0_36 = arith.constant 0 : index
    %c0_37 = arith.constant 0 : index
    %c0_38 = arith.constant 0 : index
    %c0_39 = arith.constant 0 : index
    %55 = vector.load %arg14[%c0_36, %c0_37, %c0_38, %c0_39] : memref<1x8x3x32xf32, #tpu.memory_space<vmem>>, vector<1x8x1x32xf32>
    %56 = vector.shape_cast %55 : vector<1x8x1x32xf32> to vector<8x32xf32>
    %57 = vector.shape_cast %54 : vector<8x32xf32> to vector<1x8x1x32xf32>
    tpu.vector_store %arg14[%c0_36, %c0_37, %c0_38, %c0_39], %57 {strides = array<i32>} : memref<1x8x3x32xf32, #tpu.memory_space<vmem>>, vector<1x8x1x32xf32>,
    %c0_40 = arith.constant 0 : index
    %c0_41 = arith.constant 0 : index
    %58 = vector.load %arg11[%c0_40, %c0_41] : memref<1x32xf32, #tpu.memory_space<vmem>>, vector<1x32xf32>
    %c0_42 = arith.constant 0 : index
    %c0_43 = arith.constant 0 : index
    %59 = vector.load %arg12[%c0_42, %c0_43] : memref<1x32xf32, #tpu.memory_space<vmem>>, vector<1x32xf32>
    %cst_44 = arith.constant dense<0.000000e+00> : vector<8xf32>
    %60 = vector.multi_reduction <add>, %9, %cst_44 [1] : vector<8x32xf32> to vector<8xf32>
    %61 = vector.shape_cast %60 : vector<8xf32> to vector<8x1xf32>
    %cst_45 = arith.constant 3.200000e+01 : f32
    %62 = vector.broadcast %cst_45 : f32 to vector<8x1xf32>
    %63 = arith.divf %61, %62 : vector<8x1xf32>
    %64 = vector.broadcast %63 : vector<8x1xf32> to vector<8x32xf32>
    %65 = arith.subf %9, %64 : vector<8x32xf32>
    %66 = arith.mulf %65, %65 : vector<8x32xf32>
    %cst_46 = arith.constant dense<0.000000e+00> : vector<8xf32>
    %67 = vector.multi_reduction <add>, %66, %cst_46 [1] : vector<8x32xf32> to vector<8xf32>
    %68 = vector.shape_cast %67 : vector<8xf32> to vector<8x1xf32>
    %cst_47 = arith.constant 3.200000e+01 : f32
    %69 = vector.broadcast %cst_47 : f32 to vector<8x1xf32>
    %70 = arith.divf %68, %69 : vector<8x1xf32>
    %71 = vector.broadcast %63 : vector<8x1xf32> to vector<8x32xf32>
    %72 = arith.subf %9, %71 : vector<8x32xf32>
    %cst_48 = arith.constant 9.99999974E-6 : f32
    %73 = vector.broadcast %cst_48 : f32 to vector<8x1xf32>
    %74 = arith.addf %70, %73 : vector<8x1xf32>
    %75 = math.rsqrt %74 : vector<8x1xf32>
    %76 = vector.broadcast %75 : vector<8x1xf32> to vector<8x32xf32>
    %77 = arith.mulf %72, %76 : vector<8x32xf32>
    %78 = vector.broadcast %58 : vector<1x32xf32> to vector<8x32xf32>
    %79 = arith.mulf %77, %78 : vector<8x32xf32>
    %80 = vector.broadcast %59 : vector<1x32xf32> to vector<8x32xf32>
    %81 = arith.addf %79, %80 : vector<8x32xf32>
    %c1 = arith.constant 1 : index
    %c0_49 = arith.constant 0 : index
    %c0_50 = arith.constant 0 : index
    %82 = vector.load %arg13[%c1, %c0_49, %c0_50] : memref<3x8x32xf32, #tpu.memory_space<vmem>>, vector<1x8x32xf32>
    %83 = vector.shape_cast %82 : vector<1x8x32xf32> to vector<8x32xf32>
    %84 = arith.addf %81, %83 : vector<8x32xf32>
    %c0_51 = arith.constant 0 : index
    %c0_52 = arith.constant 0 : index
    %c1_53 = arith.constant 1 : index
    %c0_54 = arith.constant 0 : index
    %85 = vector.load %arg14[%c0_51, %c0_52, %c1_53, %c0_54] : memref<1x8x3x32xf32, #tpu.memory_space<vmem>>, vector<1x8x1x32xf32>
    %86 = vector.shape_cast %85 : vector<1x8x1x32xf32> to vector<8x32xf32>
    %87 = vector.shape_cast %84 : vector<8x32xf32> to vector<1x8x1x32xf32>
    tpu.vector_store %arg14[%c0_51, %c0_52, %c1_53, %c0_54], %87 {strides = array<i32>} : memref<1x8x3x32xf32, #tpu.memory_space<vmem>>, vector<1x8x1x32xf32>,
    %c0_55 = arith.constant 0 : index
    %c0_56 = arith.constant 0 : index
    %88 = vector.load %arg11[%c0_55, %c0_56] : memref<1x32xf32, #tpu.memory_space<vmem>>, vector<1x32xf32>
    %c0_57 = arith.constant 0 : index
    %c0_58 = arith.constant 0 : index
    %89 = vector.load %arg12[%c0_57, %c0_58] : memref<1x32xf32, #tpu.memory_space<vmem>>, vector<1x32xf32>
    %cst_59 = arith.constant dense<0.000000e+00> : vector<8xf32>
    %90 = vector.multi_reduction <add>, %17, %cst_59 [1] : vector<8x32xf32> to vector<8xf32>
    %91 = vector.shape_cast %90 : vector<8xf32> to vector<8x1xf32>
    %cst_60 = arith.constant 3.200000e+01 : f32
    %92 = vector.broadcast %cst_60 : f32 to vector<8x1xf32>
    %93 = arith.divf %91, %92 : vector<8x1xf32>
    %94 = vector.broadcast %93 : vector<8x1xf32> to vector<8x32xf32>
    %95 = arith.subf %17, %94 : vector<8x32xf32>
    %96 = arith.mulf %95, %95 : vector<8x32xf32>
    %cst_61 = arith.constant dense<0.000000e+00> : vector<8xf32>
    %97 = vector.multi_reduction <add>, %96, %cst_61 [1] : vector<8x32xf32> to vector<8xf32>
    %98 = vector.shape_cast %97 : vector<8xf32> to vector<8x1xf32>
    %cst_62 = arith.constant 3.200000e+01 : f32
    %99 = vector.broadcast %cst_62 : f32 to vector<8x1xf32>
    %100 = arith.divf %98, %99 : vector<8x1xf32>
    %101 = vector.broadcast %93 : vector<8x1xf32> to vector<8x32xf32>
    %102 = arith.subf %17, %101 : vector<8x32xf32>
    %cst_63 = arith.constant 9.99999974E-6 : f32
    %103 = vector.broadcast %cst_63 : f32 to vector<8x1xf32>
    %104 = arith.addf %100, %103 : vector<8x1xf32>
    %105 = math.rsqrt %104 : vector<8x1xf32>
    %106 = vector.broadcast %105 : vector<8x1xf32> to vector<8x32xf32>
    %107 = arith.mulf %102, %106 : vector<8x32xf32>
    %108 = vector.broadcast %88 : vector<1x32xf32> to vector<8x32xf32>
    %109 = arith.mulf %107, %108 : vector<8x32xf32>
    %110 = vector.broadcast %89 : vector<1x32xf32> to vector<8x32xf32>
    %111 = arith.addf %109, %110 : vector<8x32xf32>
    %c2 = arith.constant 2 : index
    %c0_64 = arith.constant 0 : index
    %c0_65 = arith.constant 0 : index
    %112 = vector.load %arg13[%c2, %c0_64, %c0_65] : memref<3x8x32xf32, #tpu.memory_space<vmem>>, vector<1x8x32xf32>
    %113 = vector.shape_cast %112 : vector<1x8x32xf32> to vector<8x32xf32>
    %114 = arith.addf %111, %113 : vector<8x32xf32>
    %c0_66 = arith.constant 0 : index
    %c0_67 = arith.constant 0 : index
    %c2_68 = arith.constant 2 : index
    %c0_69 = arith.constant 0 : index
    %115 = vector.load %arg14[%c0_66, %c0_67, %c2_68, %c0_69] : memref<1x8x3x32xf32, #tpu.memory_space<vmem>>, vector<1x8x1x32xf32>
    %116 = vector.shape_cast %115 : vector<1x8x1x32xf32> to vector<8x32xf32>
    %117 = vector.shape_cast %114 : vector<8x32xf32> to vector<1x8x1x32xf32>
    tpu.vector_store %arg14[%c0_66, %c0_67, %c2_68, %c0_69], %117 {strides = array<i32>} : memref<1x8x3x32xf32, #tpu.memory_space<vmem>>, vector<1x8x1x32xf32>,
    return
  }
  func.func @transform_0(%arg0: i32) -> (i32, i32, i32) {
    %c0_i32 = arith.constant 0 : i32
    %c0_i32_0 = arith.constant 0 : i32
    %c0_i32_1 = arith.constant 0 : i32
    return %arg0, %c0_i32, %c0_i32_0 : i32, i32, i32
  }
  func.func @transform_1(%arg0: i32) -> (i32, i32, i32) {
    %c0_i32 = arith.constant 0 : i32
    %c0_i32_0 = arith.constant 0 : i32
    %c0_i32_1 = arith.constant 0 : i32
    return %arg0, %c0_i32, %c0_i32_0 : i32, i32, i32
  }
  func.func @transform_2(%arg0: i32) -> (i32, i32, i32) {
    %c0_i32 = arith.constant 0 : i32
    %c0_i32_0 = arith.constant 0 : i32
    %c0_i32_1 = arith.constant 0 : i32
    return %arg0, %c0_i32, %c0_i32_0 : i32, i32, i32
  }
  func.func @transform_3(%arg0: i32) -> (i32, i32, i32) {
    %c0_i32 = arith.constant 0 : i32
    %c0_i32_0 = arith.constant 0 : i32
    %c0_i32_1 = arith.constant 0 : i32
    return %arg0, %c0_i32, %c0_i32_0 : i32, i32, i32
  }
  func.func @transform_4(%arg0: i32) -> (i32, i32) {
    %c0_i32 = arith.constant 0 : i32
    %c0_i32_0 = arith.constant 0 : i32
    %c0_i32_1 = arith.constant 0 : i32
    return %c0_i32, %c0_i32_0 : i32, i32
  }
  func.func @transform_5(%arg0: i32) -> (i32, i32) {
    %c0_i32 = arith.constant 0 : i32
    %c0_i32_0 = arith.constant 0 : i32
    %c0_i32_1 = arith.constant 0 : i32
    return %c0_i32, %c0_i32_0 : i32, i32
  }
  func.func @transform_6(%arg0: i32) -> (i32, i32) {
    %c0_i32 = arith.constant 0 : i32
    %c0_i32_0 = arith.constant 0 : i32
    %c0_i32_1 = arith.constant 0 : i32
    return %c0_i32, %c0_i32_0 : i32, i32
  }
  func.func @transform_7(%arg0: i32) -> (i32, i32) {
    %c0_i32 = arith.constant 0 : i32
    %c0_i32_0 = arith.constant 0 : i32
    %c0_i32_1 = arith.constant 0 : i32
    return %c0_i32, %c0_i32_0 : i32, i32
  }
  func.func @transform_8(%arg0: i32) -> (i32, i32) {
    %c0_i32 = arith.constant 0 : i32
    %c0_i32_0 = arith.constant 0 : i32
    %c0_i32_1 = arith.constant 0 : i32
    return %c0_i32, %c0_i32_0 : i32, i32
  }
  func.func @transform_9(%arg0: i32) -> (i32, i32) {
    %c0_i32 = arith.constant 0 : i32
    %c0_i32_0 = arith.constant 0 : i32
    %c0_i32_1 = arith.constant 0 : i32
    return %c0_i32, %c0_i32_0 : i32, i32
  }
  func.func @transform_10(%arg0: i32) -> (i32, i32) {
    %c0_i32 = arith.constant 0 : i32
    %c0_i32_0 = arith.constant 0 : i32
    %c0_i32_1 = arith.constant 0 : i32
    return %c0_i32, %c0_i32_0 : i32, i32
  }
  func.func @transform_11(%arg0: i32) -> (i32, i32) {
    %c0_i32 = arith.constant 0 : i32
    %c0_i32_0 = arith.constant 0 : i32
    %c0_i32_1 = arith.constant 0 : i32
    return %c0_i32, %c0_i32_0 : i32, i32
  }
  func.func @transform_12(%arg0: i32) -> (i32, i32, i32) {
    %c0_i32 = arith.constant 0 : i32
    %c0_i32_0 = arith.constant 0 : i32
    %c0_i32_1 = arith.constant 0 : i32
    %c0_i32_2 = arith.constant 0 : i32
    return %c0_i32, %c0_i32_0, %c0_i32_1 : i32, i32, i32
  }
  func.func @transform_13(%arg0: i32) -> (i32, i32, i32, i32) {
    %c0_i32 = arith.constant 0 : i32
    %c0_i32_0 = arith.constant 0 : i32
    %c0_i32_1 = arith.constant 0 : i32
    %c0_i32_2 = arith.constant 0 : i32
    return %arg0, %c0_i32, %c0_i32_0, %c0_i32_1 : i32, i32, i32, i32
  }
}

</mosaic_0001>

<bundles_post_ra>
// kernel: tpu_custom_call.1
= control target key start
LH: loop header
LB: loop body
LE: loop exit
PB: predicated region body
PF: predicated region fallthrough
CT: control target
= control target key end

     0   :  { %s1221_s25 = smov 0   ;;  %s1360_s0 = inlined_call_operand.vmem [shape: f32[2,8,6], index: 0, kind: input, shape index: {}]   ;;  %s1361_s1 = inlined_call_operand.vmem [shape: f32[2,8,3], index: 1, kind: input, shape index: {}]   ;;  %s1362_s2 = inlined_call_operand.vmem [shape: f32[2,8,1], index: 2, kind: input, shape index: {}]   ;;  %s1363_s3 = inlined_call_operand.vmem [shape: f32[2,8,32], index: 3, kind: input, shape index: {}]   ;;  %s1364_s4 = inlined_call_operand.vmem [shape: f32[6,32], index: 4, kind: input, shape index: {}]   ;;  %s1365_s5 = inlined_call_operand.vmem [shape: f32[1,32], index: 5, kind: input, shape index: {}]   ;;  %s1366_s6 = inlined_call_operand.vmem [shape: f32[3,32], index: 6, kind: input, shape index: {}]   ;;  %s1367_s7 = inlined_call_operand.vmem [shape: f32[1,32], index: 7, kind: input, shape index: {}]   ;;  %s1368_s8 = inlined_call_operand.vmem [shape: f32[1,32], index: 8, kind: input, shape index: {}]   ;;  %s1369_s9 = inlined_call_operand.vmem [shape: f32[1,32], index: 9, kind: input, shape index: {}]   ;;  %s1370_s10 = inlined_call_operand.vmem [shape: f32[1,32], index: 10, kind: input, shape index: {}]   ;;  %s1371_s11 = inlined_call_operand.vmem [shape: f32[1,32], index: 11, kind: input, shape index: {}]   ;;  %s1372_s12 = inlined_call_operand.vmem [shape: f32[3,8,32], index: 12, kind: input, shape index: {}]   ;;  %s1373_s13 = inlined_call_operand.vmem [shape: f32[2,8,3,32], index: 13, kind: output, shape index: {}]  }
   0x1 LB: > { %s1076_s26 = sadd.s32 4294967295, %s1145_s25   ;;  %p1080_p0 = scmp.ge.s32.totalorder %s1145_s25, 1  ;;  %s1145_s25 = sphi %s1221_s25, %s23_s25  }
   0x2   : > { %p413_p1 = scmp.lt.s32.totalorder %s1145_s25, 3 }
   0x4   : > { %p414_p2 = pnand %p1080_p0, %p413_p1 }
   0x5   : > { %p468_p3 = scmp.lt.s32.totalorder (!%p414_p2), %s1076_s26, 1 }
   0x6   : > { %417 = sbr.rel (%p414_p2) target bundleno = 540 (0x21c), region = 72 }
   0xb   : > { %v491_v0 = vld [vmem:[%s1364_s4] sm:$0x3f]  ;;  %vm503_vm0 = vcmask 1045504   ;;  %v1147_v1 = vmov 0.0   ;;  %v1148_v2 = vmov 0   ;;  %vm591_vm1 = vcmask 1042432  }
   0xc   : > { %1110 = vmatprep.subr.mxu0 %v1147_v1  ;;  %1132 = vset.pattern.permute.xlu0 %v1148_v2  ;;  %v579_v3 = vld [vmem:[%s1366_s6] sm:$0x7]  ;;  %vm1149_vm2 = vmmov 0   ;;  %s1375_s26 = smov (!%p468_p3, %s1076_s26), 1  ;;  %vm499_vm3 = vcmask 48128   ;;  %vm587_vm4 = vcmask 23552   ;;  %v727_v47 = vlaneseq }
   0xd   : > { %1111 = vmatpush3.msk.msra.mxu0 %vm503_vm0, %v491_v0  ;;  %1112 = vmatprep.mubr.msk.f32.mxu0 %vm1149_vm2, %v1147_v1  ;;  %s1081_s14 = sshll.u32 %s1375_s26, 3  ;;  %v1093_v7 = vld [vmem:[%s1368_s8] ss:$0 sm:$0xff]  ;;  %vm691_vm5 = vcmask 261120   ;;  %v1150_v45 = vmov 1966171168  }
   0xe   : > { %1115 = vmatprep.subr.mxu1 %v1147_v1  ;;  %1117 = vmatprep.mubr.msk.f32.mxu1 %vm1149_vm2, %v1147_v1  ;;  %s479_s17 = scalar_lea.vmem %s1362_s2, %s1081_s14  ;;  %s471_s20 = scalar_lea.vmem %s1360_s0, %s1081_s14  ;;  %v1094_v8 = vld [vmem:[%s1369_s9] ss:$0 sm:$0xff]  ;;  %v725_v46 = vunpack.c.l.s4 %v1150_v45  ;;  %v728_v51 = vshrl.u32 %v727_v47, 7  ;;  %vm780_vm6 = vcmask 253952  }
   0xf   : > { %1116 = vmatpush3.msk.msra.mxu1 %vm591_vm1, %v579_v3  ;;  %v666_v4 = vld [vmem:[%s479_s17] sm:$0xff]  ;;  %s475_s23 = scalar_lea.vmem %s1361_s1, %s1081_s14  ;;  %s483_s30 = scalar_lea.vmem %s1363_s3, %s1081_s14 }
  0x10   : > { %670 = vperm.xlu0 %1132, %v666_v4   ;;  %v490_v5 = vld [vmem:[%s471_s20] sm:$0xff]  ;;  %v726_v50 = vunpack.c.0.s8 %v725_v46  ;;  %s1105_s28 = sshll.u32 %s1375_s26, 5 }
  0x11   : > { %v578_v6 = vld [vmem:[%s475_s23] sm:$0xff]  ;;  %1113 = vmatmul.mubr.msk.f32.vlgmr.msra.gmra.mxu0 %vm499_vm3, %v490_v5  ;;  %s1284_s15 = scalar_lea.vmem %s1373_s13, %s1105_s28 }
  0x12   : > { %1118 = vmatmul.mubr.msk.f32.vlgmr.msra.gmra.mxu1 %vm587_vm4, %v578_v6  ;;  %v489_v11 = vld [vmem:[%s483_s30] sm:$0xff]  ;;  %v1277_v56 = vsub.s32 %v726_v50, %v728_v51 }
  0x13   : > { %v1087_v15 = vld [vmem:[%s1365_s5] ss:$0 sm:$0xff] }
  0x14   : > { %v1090_v16 = vld [vmem:[%s1367_s7] ss:$0 sm:$0xff] }
  0x15   : > { %v1095_v49 = vld [vmem:[%s1370_s10] ss:$0 sm:$0xff] }
  0x16   : > { %v1096_v53 = vld [vmem:[%s1371_s11] ss:$0 sm:$0xff] }
  0x17   : > { %v720_v55 = vld [vmem:[%s1372_s12] sm:$0xff] }
  0x8b   : > { %v671_v9 = vpop.permute.xlu0 %670 }
  0x8c   : > { %v679_v10 = vmul.f32 %v1093_v7, %v671_v9 }
  0x8e   : > { %v687_v12 = vadd.f32 %v1094_v8, %v679_v10 }
  0x90   : > { %v688_v13 = vadd.f32 %v687_v12, %v489_v11 }
  0x92   : > { %v692_v14 = vsel %vm691_vm5, %v688_v13, 0.0 }
  0x93   : > { %693 = vadd.xlane.f32.xlu0 %v692_v14 }
  0xd1   : > { %v573_v17 = vpop.f32.mrf.mxu0 }
  0xd2   : > { %v661_v18 = vpop.f32.mrf.mxu1  ;;  %v574_v19 = vadd.f32 %v1087_v15, %v573_v17 }
  0xd3   : > { %v662_v20 = vadd.f32 %v1090_v16, %v661_v18  ;;  %v1114_v21 = vpop.f32.mrf.mxu0  ;;  %v1099_v18 = vld [vmem:[%s1372_s12 + $0x8] sm:$0xff] }
  0xd4   : > { %v1119_v22 = vpop.f32.mrf.mxu1  ;;  %v577_v23 = vadd.f32 %v574_v19, %v489_v11 }
  0xd5   : > { %v665_v24 = vadd.f32 %v662_v20, %v489_v11 }
  0xd6   : > { %v791_v25 = vsel %vm691_vm5, %v577_v23, 0.0 }
  0xd7   : > { %792 = vadd.xlane.f32.xlu1 %v791_v25  ;;  %v889_v26 = vsel %vm691_vm5, %v665_v24, 0.0 }
  0xdb   : > { %890 = vadd.xlane.f32.xlu1 %v889_v26 }
 0x11c   : > { %v694_v27 = vpop.xlane.xlu0 %693 }
 0x11d   : > { %v696_v28 = vmul.f32 0.03125, %v694_v27 }
 0x11f   : > { %v697_v29 = vsub.f32 %v688_v13, %v696_v28 }
 0x121   : > { %v698_v30 = vmul.f32 %v697_v29, %v697_v29 }
 0x123   : > { %v699_v31 = vsel %vm691_vm5, %v698_v30, 0.0 }
 0x124   : > { %700 = vadd.xlane.f32.xlu1 %v699_v31 }
 0x160   : > { %v793_v32 = vpop.xlane.xlu1 %792 }
 0x161   : > { %v794_v33 = vmul.f32 0.03125, %v793_v32 }
 0x163   : > { %v795_v34 = vsub.f32 %v577_v23, %v794_v33  ;;  %v1102_v23 = vld [vmem:[%s1372_s12 + $0x10] sm:$0xff] }
 0x164   : > { %v891_v35 = vpop.xlane.xlu1 %890 }
 0x165   : > { %v892_v36 = vmul.f32 0.03125, %v891_v35  ;;  %v796_v37 = vmul.f32 %v795_v34, %v795_v34 }
 0x167   : > { %v893_v38 = vsub.f32 %v665_v24, %v892_v36  ;;  %v797_v39 = vsel %vm691_vm5, %v796_v37, 0.0 }
 0x168   : > { %798 = vadd.xlane.f32.xlu1 %v797_v39 }
 0x169   : > { %v894_v40 = vmul.f32 %v893_v38, %v893_v38 }
 0x16b   : > { %v895_v41 = vsel %vm691_vm5, %v894_v40, 0.0 }
 0x16c   : > { %896 = vadd.xlane.f32.xlu1 %v895_v41 }
 0x1ad   : > { %v701_v42 = vpop.xlane.xlu1 %700 }
 0x1ae   : > { %v702_v43 = vmul.f32 0.03125, %v701_v42 }
 0x1b0   : > { %v703_v44 = vadd.f32 1e-05, %v702_v43 }
 0x1b2   : > { %1133 = vrsqrt.f32 %v703_v44 }
 0x1bf   : > { %v1134_v48 = vpop.eup %1133 }
 0x1c0   : > { %v705_v52 = vmul.f32 %v1134_v48, %v697_v29 }
 0x1c2   : > { %v712_v54 = vmul.f32 %v1095_v49, %v705_v52 }
 0x1c4   : > { %v719_v57 = vadd.f32 %v1096_v53, %v712_v54 }
 0x1c6   : > { %v721_v58 = vadd.f32 %v720_v55, %v719_v57 }
 0x1c8   : > { %v723_v59 = vcombine.high %v721_v58, %v721_v58  ;;  %v730_v60 = vrot.slane %v721_v58, %v1277_v56 }
 0x1ca   : > { %v737_v61 = vrot.slane %v723_v59, %v1277_v56  ;;  %v738_v62 = vcombine.high %v730_v60, %v730_v60  ;;  %v746_v63 = vrot.slane %v730_v60, %v1277_v56 }
 0x1cc   : > { %v739_v0 = vcombine.high %v737_v61, %v737_v61  ;;  %v753_v1 = vrot.slane %v737_v61, %v1277_v56  ;;  %v760_v2 = vrot.slane %v738_v62, %v1277_v56  ;;  %v768_v3 = vcombine.high %v746_v63, %v746_v63  ;;  %781 = vst.msk [vmem:[%s1284_s15] sm:$0x1] %vm780_vm6, %v746_v63 }
 0x1ce   : > { %v767_v4 = vrot.slane %v739_v0, %v1277_v56  ;;  %v769_v5 = vcombine.high %v753_v1, %v753_v1  ;;  %v770_v6 = vcombine.high %v760_v2, %v760_v2  ;;  %782 = vst.msk [vmem:[%s1284_s15 + $0x4] sm:$0x1] %vm780_vm6, %v760_v2  ;;  %783 = vst.msk [vmem:[%s1284_s15 + $0x8] sm:$0x1] %vm780_vm6, %v768_v3 }
 0x1cf   : > { %785 = vst.msk [vmem:[%s1284_s15 + $0x10] sm:$0x1] %vm780_vm6, %v753_v1 }
 0x1d0   : > { %v771_v7 = vcombine.high %v767_v4, %v767_v4  ;;  %784 = vst.msk [vmem:[%s1284_s15 + $0xc] sm:$0x1] %vm780_vm6, %v770_v6  ;;  %786 = vst.msk [vmem:[%s1284_s15 + $0x14] sm:$0x1] %vm780_vm6, %v767_v4 }
 0x1d1   : > { %787 = vst.msk [vmem:[%s1284_s15 + $0x18] sm:$0x1] %vm780_vm6, %v769_v5 }
 0x1d2   : > { %788 = vst.msk [vmem:[%s1284_s15 + $0x1c] sm:$0x1] %vm780_vm6, %v771_v7 }
 0x1f1   : > { %v799_v8 = vpop.xlane.xlu1 %798 }
 0x1f2   : > { %v800_v9 = vmul.f32 0.03125, %v799_v8 }
 0x1f4   : > { %v801_v10 = vadd.f32 1e-05, %v800_v9 }
 0x1f5   : > { %v897_v11 = vpop.xlane.xlu1 %896 }
 0x1f6   : > { %1135 = vrsqrt.f32 %v801_v10  ;;  %v898_v12 = vmul.f32 0.03125, %v897_v11 }
 0x1f8   : > { %v899_v13 = vadd.f32 1e-05, %v898_v12 }
 0x1fa   : > { %1137 = vrsqrt.f32 %v899_v13 }
 0x203   : > { %v1136_v14 = vpop.eup %1135 }
 0x204   : > { %v803_v15 = vmul.f32 %v1136_v14, %v795_v34 }
 0x206   : > { %v810_v16 = vmul.f32 %v1095_v49, %v803_v15 }
 0x207   : > { %v1138_v17 = vpop.eup %1137 }
 0x208   : > { %v817_v19 = vadd.f32 %v1096_v53, %v810_v16  ;;  %v901_v20 = vmul.f32 %v1138_v17, %v893_v38 }
 0x20a   : > { %v820_v21 = vadd.f32 %v1099_v18, %v817_v19  ;;  %v908_v22 = vmul.f32 %v1095_v49, %v901_v20 }
 0x20c   : > { %v822_v24 = vcombine.high %v820_v21, %v820_v21  ;;  %v829_v25 = vrot.slane %v820_v21, %v1277_v56  ;;  %v915_v26 = vadd.f32 %v1096_v53, %v908_v22 }
 0x20e   : > { %v836_v27 = vrot.slane %v822_v24, %v1277_v56  ;;  %v837_v28 = vcombine.high %v829_v25, %v829_v25  ;;  %v845_v29 = vrot.slane %v829_v25, %v1277_v56  ;;  %v918_v30 = vadd.f32 %v1102_v23, %v915_v26 }
 0x210   : > { %v838_v31 = vcombine.high %v836_v27, %v836_v27  ;;  %v852_v32 = vrot.slane %v836_v27, %v1277_v56  ;;  %v859_v33 = vrot.slane %v837_v28, %v1277_v56  ;;  %v867_v34 = vcombine.high %v845_v29, %v845_v29  ;;  %879 = vst.msk [vmem:[%s1284_s15 + $0x1] sm:$0x1] %vm780_vm6, %v845_v29 }
 0x211   : > { %v920_v35 = vcombine.high %v918_v30, %v918_v30  ;;  %v927_v36 = vrot.slane %v918_v30, %v1277_v56 }
 0x212   : > { %v866_v37 = vrot.slane %v838_v31, %v1277_v56  ;;  %v868_v38 = vcombine.high %v852_v32, %v852_v32  ;;  %v869_v39 = vcombine.high %v859_v33, %v859_v33  ;;  %880 = vst.msk [vmem:[%s1284_s15 + $0x5] sm:$0x1] %vm780_vm6, %v859_v33  ;;  %881 = vst.msk [vmem:[%s1284_s15 + $0x9] sm:$0x1] %vm780_vm6, %v867_v34 }
 0x213   : > { %883 = vst.msk [vmem:[%s1284_s15 + $0x11] sm:$0x1] %vm780_vm6, %v852_v32  ;;  %v934_v40 = vrot.slane %v920_v35, %v1277_v56  ;;  %v935_v41 = vcombine.high %v927_v36, %v927_v36  ;;  %v943_v42 = vrot.slane %v927_v36, %v1277_v56 }
 0x214   : > { %v870_v43 = vcombine.high %v866_v37, %v866_v37  ;;  %882 = vst.msk [vmem:[%s1284_s15 + $0xd] sm:$0x1] %vm780_vm6, %v869_v39  ;;  %884 = vst.msk [vmem:[%s1284_s15 + $0x15] sm:$0x1] %vm780_vm6, %v866_v37 }
 0x215   : > { %885 = vst.msk [vmem:[%s1284_s15 + $0x19] sm:$0x1] %vm780_vm6, %v868_v38  ;;  %v936_v44 = vcombine.high %v934_v40, %v934_v40  ;;  %v950_v45 = vrot.slane %v934_v40, %v1277_v56  ;;  %v957_v46 = vrot.slane %v935_v41, %v1277_v56  ;;  %v965_v47 = vcombine.high %v943_v42, %v943_v42 }
 0x216   : > { %977 = vst.msk [vmem:[%s1284_s15 + $0x2] sm:$0x1] %vm780_vm6, %v943_v42  ;;  %886 = vst.msk [vmem:[%s1284_s15 + $0x1d] sm:$0x1] %vm780_vm6, %v870_v43 }
 0x217   : > { %v964_v48 = vrot.slane %v936_v44, %v1277_v56  ;;  %v966_v49 = vcombine.high %v950_v45, %v950_v45  ;;  %v967_v50 = vcombine.high %v957_v46, %v957_v46  ;;  %978 = vst.msk [vmem:[%s1284_s15 + $0x6] sm:$0x1] %vm780_vm6, %v957_v46  ;;  %979 = vst.msk [vmem:[%s1284_s15 + $0xa] sm:$0x1] %vm780_vm6, %v965_v47 }
 0x218   : > { %981 = vst.msk [vmem:[%s1284_s15 + $0x12] sm:$0x1] %vm780_vm6, %v950_v45 }
 0x219   : > { %v968_v51 = vcombine.high %v964_v48, %v964_v48  ;;  %980 = vst.msk [vmem:[%s1284_s15 + $0xe] sm:$0x1] %vm780_vm6, %v967_v50  ;;  %982 = vst.msk [vmem:[%s1284_s15 + $0x16] sm:$0x1] %vm780_vm6, %v964_v48 }
 0x21a   : > { %983 = vst.msk [vmem:[%s1284_s15 + $0x1a] sm:$0x1] %vm780_vm6, %v966_v49 }
 0x21b   : > { %984 = vst.msk [vmem:[%s1284_s15 + $0x1e] sm:$0x1] %vm780_vm6, %v968_v51 }
 0x21c PF: > { %s23_s25 = sadd.s32 1, %s1145_s25  }
 0x21d   : > { %p20_p4 = scmp.ge.s32.totalorder %s23_s25, 4  }
 0x21f   :  { %22 = sbr.rel (!%p20_p4) target bundleno = 1 (0x1), region = 113 }

</bundles_post_ra>
